<compile_context>
chip_gen: v6e
topology: v6e:2x2x1
jax: 0.10.0
libtpu: 0.0.40
codegen_flags: <defaults>
</compile_context>

<pallas_src>
import math
import jax
import jax.numpy as jnp
from jax.experimental import pallas as pl
from jax.experimental.pallas import tpu as pltpu

GELU_C = math.sqrt(2.0 / math.pi)


def _round_up(x, m):
    return ((x + m - 1) // m) * m


def ffn_kernel(x_ref, w1_ref, b1_ref, w2_ref, b2_ref, o_ref, acc_ref):
    # x_ref  : (TM, Dm)      activation row tile (compute dtype)
    # w1_ref : (Dm, TF)      W1 column slice
    # b1_ref : (1, TF)       b1 slice (f32)
    # w2_ref : (TF, Dm)      W2 row slice
    # b2_ref : (1, Dm)       b2 (f32)
    # o_ref  : (TM, Dm)      output tile (resident across the d_ff axis)
    # acc_ref: (TM, Dm) f32  VMEM accumulator
    k = pl.program_id(1)

    @pl.when(k == 0)
    def _():
        # Seed the accumulator with b2 (broadcast) so the epilogue is a pure cast.
        acc_ref[...] = jnp.broadcast_to(b2_ref[...], acc_ref.shape).astype(jnp.float32)

    # w_1 linear on this d_ff slice (MXU, f32 accumulation).
    h = jnp.dot(x_ref[...], w1_ref[...], preferred_element_type=jnp.float32)
    h = h + b1_ref[...]

    # tanh-approx GELU (matches the PyTorch GELU module), on the (TM, TF) chunk only.
    g = 0.5 * h * (1.0 + jnp.tanh(GELU_C * (h + 0.044715 * (h * h * h))))

    # w_2 linear: accumulate this slice's contribution into the f32 scratch.
    acc_ref[...] += jnp.dot(g.astype(w2_ref.dtype), w2_ref[...],
                            preferred_element_type=jnp.float32)

    @pl.when(k == pl.num_programs(1) - 1)
    def _():
        o_ref[...] = acc_ref[...].astype(o_ref.dtype)


def feed_forward(x, w1, b1, w2, b2, *, tile_m=256, tile_f=512, compute_dtype=None):
    """x: (..., d_model); w1: (d_model, d_ff); b1: (d_ff,); w2: (d_ff, d_model); b2: (d_model,)."""
    orig_shape = x.shape
    d_model = orig_shape[-1]
    x2d = x.reshape(-1, d_model)
    n = x2d.shape[0]
    d_ff = w1.shape[1]
    out_dtype = x.dtype
    cdt = jnp.dtype(compute_dtype) if compute_dtype is not None else jnp.dtype(x.dtype)

    # --- pad to TPU-friendly shapes (lane dim multiple of 128, sublane of 8) ---
    d_model_p = _round_up(d_model, 128)
    tile_m = max(8, min(tile_m, _round_up(n, 8)))
    # Keep >= 2 row tiles when possible so v7x's two TensorCores both get work.
    while n > tile_m and _round_up(n, tile_m) // tile_m < 2 and tile_m > 128:
        tile_m //= 2
    n_p = _round_up(n, tile_m)
    tile_f = max(128, min(tile_f, _round_up(d_ff, 128)))
    d_ff_p = _round_up(d_ff, tile_f)

    xp = jnp.zeros((n_p, d_model_p), cdt).at[:n, :d_model].set(x2d.astype(cdt))
    w1p = jnp.zeros((d_model_p, d_ff_p), cdt).at[:d_model, :d_ff].set(w1.astype(cdt))
    w2p = jnp.zeros((d_ff_p, d_model_p), cdt).at[:d_ff, :d_model].set(w2.astype(cdt))
    b1p = jnp.zeros((1, d_ff_p), jnp.float32).at[0, :d_ff].set(b1.astype(jnp.float32))
    b2p = jnp.zeros((1, d_model_p), jnp.float32).at[0, :d_model].set(b2.astype(jnp.float32))

    grid = (n_p // tile_m, d_ff_p // tile_f)

    # VMEM budget: double-buffered streamed tiles + f32 accumulator (+ headroom).
    cb = jnp.dtype(cdt).itemsize
    ob = jnp.dtype(out_dtype).itemsize
    vmem_bytes = (2 * (tile_m * d_model_p * cb        # x tile
                       + d_model_p * tile_f * cb      # W1 slice
                       + tile_f * 4 + d_model_p * 4   # biases (f32)
                       + tile_f * d_model_p * cb      # W2 slice
                       + tile_m * d_model_p * ob)     # out tile
                  + tile_m * d_model_p * 4)           # accumulator
    vmem_limit = min(max(int(1.5 * vmem_bytes) + (4 << 20), 16 << 20), 128 << 20)

    cost = pl.CostEstimate(
        flops=2 * 2 * n_p * d_model_p * d_ff_p,                 # two matmuls
        transcendentals=n_p * d_ff_p,                           # tanh per element
        bytes_accessed=(xp.size * cb + w1p.size * cb + w2p.size * cb
                        + b1p.size * 4 + b2p.size * 4 + n_p * d_model_p * ob),
    )

    out = pl.pallas_call(
        ffn_kernel,
        out_shape=jax.ShapeDtypeStruct((n_p, d_model_p), out_dtype),
        grid_spec=pltpu.PrefetchScalarGridSpec(
            num_scalar_prefetch=0,
            grid=grid,
            in_specs=[
                pl.BlockSpec((tile_m, d_model_p), lambda i, k: (i, 0)),   # x row tile
                pl.BlockSpec((d_model_p, tile_f), lambda i, k: (0, k)),   # W1 col slice
                pl.BlockSpec((1, tile_f), lambda i, k: (0, k)),           # b1 slice
                pl.BlockSpec((tile_f, d_model_p), lambda i, k: (k, 0)),   # W2 row slice
                pl.BlockSpec((1, d_model_p), lambda i, k: (0, 0)),        # b2
            ],
            out_specs=pl.BlockSpec((tile_m, d_model_p), lambda i, k: (i, 0)),
            scratch_shapes=[pltpu.VMEM((tile_m, d_model_p), jnp.float32)],
        ),
        compiler_params=pltpu.CompilerParams(
            dimension_semantics=("parallel", "arbitrary"),
            vmem_limit_bytes=vmem_limit),
        cost_estimate=cost,
    )(xp, w1p, b1p, w2p, b2p)

    return out[:n, :d_model].reshape(orig_shape)


def feed_forward_ref(x, w1, b1, w2, b2):
    h = x @ w1 + b1
    g = 0.5 * h * (1.0 + jnp.tanh(GELU_C * (h + 0.044715 * h ** 3)))
    return g @ w2 + b2


if __name__ == "__main__":
    # --- small test matching the module's shapes (strict check, f32) ----------
    batch, seq, d_model, d_ff = 2, 8, 32, 64
    key = jax.random.PRNGKey(0)
    kx, kw1, kb1, kw2, kb2 = jax.random.split(key, 5)

    x = jax.random.normal(kx, (batch, seq, d_model), dtype=jnp.float32)
    w1 = jax.random.normal(kw1, (d_model, d_ff), dtype=jnp.float32) * (1.0 / math.sqrt(d_model))
    b1 = jax.random.normal(kb1, (d_ff,), dtype=jnp.float32) * 0.02
    w2 = jax.random.normal(kw2, (d_ff, d_model), dtype=jnp.float32) * (1.0 / math.sqrt(d_ff))
    b2 = jax.random.normal(kb2, (d_model,), dtype=jnp.float32) * 0.02

    out = feed_forward(x, w1, b1, w2, b2)            # 3D input handled by wrapper
    out = jax.block_until_ready(out)
    ref = feed_forward_ref(x.reshape(-1, d_model), w1, b1, w2, b2).reshape(batch, seq, d_model)
    assert jnp.allclose(out, ref, atol=1e-4, rtol=1e-4), "f32 mismatch vs reference"

    # bf16 matmul operands, f32 accumulation (loose tolerance).
    out_bf16 = feed_forward(x, w1, b1, w2, b2, compute_dtype=jnp.bfloat16)
    out_bf16 = jax.block_until_ready(out_bf16)
    assert jnp.allclose(out_bf16, ref, atol=1e-1, rtol=1e-1), "bf16 mismatch vs reference"

    # --- structural test: multi-tile rows + multi-step d_ff accumulation + padding ---
    n2, dm2, dff2 = 320, 256, 640
    k2 = jax.random.split(jax.random.PRNGKey(1), 5)
    x2 = jax.random.normal(k2[0], (n2, dm2), dtype=jnp.float32)
    w1_2 = jax.random.normal(k2[1], (dm2, dff2), dtype=jnp.float32) * (1.0 / math.sqrt(dm2))
    b1_2 = jax.random.normal(k2[2], (dff2,), dtype=jnp.float32) * 0.02
    w2_2 = jax.random.normal(k2[3], (dff2, dm2), dtype=jnp.float32) * (1.0 / math.sqrt(dff2))
    b2_2 = jax.random.normal(k2[4], (dm2,), dtype=jnp.float32) * 0.02

    out2 = feed_forward(x2, w1_2, b1_2, w2_2, b2_2, tile_m=128, tile_f=256)
    out2 = jax.block_until_ready(out2)
    ref2 = feed_forward_ref(x2, w1_2, b1_2, w2_2, b2_2)
    assert jnp.allclose(out2, ref2, atol=2e-2, rtol=2e-2), "structural mismatch vs reference"

    print("KERNEL_OK")
</pallas_src>

<mosaic_0001>
module attributes {stable_mosaic.version = 11 : i64} {
  func.func @ffn_kernel(%arg0: i32, %arg1: i32, %arg2: memref<16x128xf32, #tpu.memory_space<vmem>>, %arg3: memref<128x128xf32, #tpu.memory_space<vmem>>, %arg4: memref<1x128xf32, #tpu.memory_space<vmem>>, %arg5: memref<128x128xf32, #tpu.memory_space<vmem>>, %arg6: memref<1x128xf32, #tpu.memory_space<vmem>>, %arg7: memref<16x128xf32, #tpu.memory_space<vmem>>, %arg8: memref<16x128xf32, #tpu.memory_space<vmem>>) attributes {dimension_semantics = [#tpu.dimension_semantics<parallel>, #tpu.dimension_semantics<arbitrary>], iteration_bounds = array<i64: 1, 1>, scalar_prefetch = 0 : i64, scratch_operands = 1 : i64, tpu.core_type = #tpu.core_type<tc>, window_params = [{transform_indices = @transform_0, window_bounds = array<i64: 16, 128>}, {transform_indices = @transform_1, window_bounds = array<i64: 128, 128>}, {transform_indices = @transform_2, window_bounds = array<i64: 1, 128>}, {transform_indices = @transform_3, window_bounds = array<i64: 128, 128>}, {pipeline_mode = #tpu.pipeline_mode<synchronous>, transform_indices = @transform_4, window_bounds = array<i64: 1, 128>}, {transform_indices = @transform_5, window_bounds = array<i64: 16, 128>}]} {
    %c0_i32 = arith.constant 0 : i32
    %0 = arith.cmpi eq, %arg1, %c0_i32 : i32
    %1 = arith.extui %0 : i1 to i32
    %c0_i32_0 = arith.constant 0 : i32
    %2 = arith.cmpi ne, %1, %c0_i32_0 : i32
    scf.if %2 {
      %c0_19 = arith.constant 0 : index
      %c0_20 = arith.constant 0 : index
      %30 = vector.load %arg6[%c0_19, %c0_20] : memref<1x128xf32, #tpu.memory_space<vmem>>, vector<1x128xf32>
      %31 = vector.shape_cast %30 : vector<1x128xf32> to vector<1x128xf32>
      %32 = vector.broadcast %31 : vector<1x128xf32> to vector<16x128xf32>
      %c0_21 = arith.constant 0 : index
      %c0_22 = arith.constant 0 : index
      %33 = vector.load %arg8[%c0_21, %c0_22] : memref<16x128xf32, #tpu.memory_space<vmem>>, vector<16x128xf32>
      tpu.vector_store %arg8[%c0_21, %c0_22], %32 {strides = array<i32>} : memref<16x128xf32, #tpu.memory_space<vmem>>, vector<16x128xf32>,
    } else {
    }
    %c0 = arith.constant 0 : index
    %c0_1 = arith.constant 0 : index
    %3 = vector.load %arg2[%c0, %c0_1] : memref<16x128xf32, #tpu.memory_space<vmem>>, vector<16x128xf32>
    %c0_2 = arith.constant 0 : index
    %c0_3 = arith.constant 0 : index
    %4 = vector.load %arg3[%c0_2, %c0_3] : memref<128x128xf32, #tpu.memory_space<vmem>>, vector<128x128xf32>
    %cst = arith.constant dense<0.000000e+00> : vector<16x128xf32>
    %5 = tpu.matmul %3, %4, %cst {dimension_numbers = #tpu.dot_dimension_numbers<[1], [0], [0], [1], [0, 0, 1, 1], [], []>} : vector<16x128xf32>, vector<128x128xf32>, vector<16x128xf32> -> vector<16x128xf32>
    %c0_4 = arith.constant 0 : index
    %c0_5 = arith.constant 0 : index
    %6 = vector.load %arg4[%c0_4, %c0_5] : memref<1x128xf32, #tpu.memory_space<vmem>>, vector<1x128xf32>
    %7 = vector.broadcast %6 : vector<1x128xf32> to vector<16x128xf32>
    %8 = arith.addf %5, %7 : vector<16x128xf32>
    %cst_6 = arith.constant 5.000000e-01 : f32
    %9 = vector.broadcast %cst_6 : f32 to vector<16x128xf32>
    %10 = arith.mulf %9, %8 : vector<16x128xf32>
    %11 = arith.mulf %8, %8 : vector<16x128xf32>
    %12 = arith.mulf %11, %8 : vector<16x128xf32>
    %cst_7 = arith.constant 4.471500e-02 : f32
    %13 = vector.broadcast %cst_7 : f32 to vector<16x128xf32>
    %14 = arith.mulf %13, %12 : vector<16x128xf32>
    %15 = arith.addf %8, %14 : vector<16x128xf32>
    %cst_8 = arith.constant 0.797884583 : f32
    %16 = vector.broadcast %cst_8 : f32 to vector<16x128xf32>
    %17 = arith.mulf %16, %15 : vector<16x128xf32>
    %18 = math.tanh %17 : vector<16x128xf32>
    %cst_9 = arith.constant 1.000000e+00 : f32
    %19 = vector.broadcast %cst_9 : f32 to vector<16x128xf32>
    %20 = arith.addf %19, %18 : vector<16x128xf32>
    %21 = arith.mulf %10, %20 : vector<16x128xf32>
    %c0_10 = arith.constant 0 : index
    %c0_11 = arith.constant 0 : index
    %22 = vector.load %arg8[%c0_10, %c0_11] : memref<16x128xf32, #tpu.memory_space<vmem>>, vector<16x128xf32>
    %c0_12 = arith.constant 0 : index
    %c0_13 = arith.constant 0 : index
    %23 = vector.load %arg5[%c0_12, %c0_13] : memref<128x128xf32, #tpu.memory_space<vmem>>, vector<128x128xf32>
    %cst_14 = arith.constant dense<0.000000e+00> : vector<16x128xf32>
    %24 = tpu.matmul %21, %23, %cst_14 {dimension_numbers = #tpu.dot_dimension_numbers<[1], [0], [0], [1], [0, 0, 1, 1], [], []>} : vector<16x128xf32>, vector<128x128xf32>, vector<16x128xf32> -> vector<16x128xf32>
    %25 = arith.addf %22, %24 : vector<16x128xf32>
    %c0_15 = arith.constant 0 : index
    %c0_16 = arith.constant 0 : index
    %26 = vector.load %arg8[%c0_15, %c0_16] : memref<16x128xf32, #tpu.memory_space<vmem>>, vector<16x128xf32>
    tpu.vector_store %arg8[%c0_15, %c0_16], %25 {strides = array<i32>} : memref<16x128xf32, #tpu.memory_space<vmem>>, vector<16x128xf32>,
    %c0_i32_17 = arith.constant 0 : i32
    %27 = arith.cmpi eq, %arg1, %c0_i32_17 : i32
    %28 = arith.extui %27 : i1 to i32
    %c0_i32_18 = arith.constant 0 : i32
    %29 = arith.cmpi ne, %28, %c0_i32_18 : i32
    scf.if %29 {
      %c0_19 = arith.constant 0 : index
      %c0_20 = arith.constant 0 : index
      %30 = vector.load %arg8[%c0_19, %c0_20] : memref<16x128xf32, #tpu.memory_space<vmem>>, vector<16x128xf32>
      %c0_21 = arith.constant 0 : index
      %c0_22 = arith.constant 0 : index
      %31 = vector.load %arg7[%c0_21, %c0_22] : memref<16x128xf32, #tpu.memory_space<vmem>>, vector<16x128xf32>
      tpu.vector_store %arg7[%c0_21, %c0_22], %30 {strides = array<i32>} : memref<16x128xf32, #tpu.memory_space<vmem>>, vector<16x128xf32>,
    } else {
    }
    return
  }
  func.func @transform_0(%arg0: i32, %arg1: i32) -> (i32, i32) {
    %c0_i32 = arith.constant 0 : i32
    %c0_i32_0 = arith.constant 0 : i32
    return %arg0, %c0_i32 : i32, i32
  }
  func.func @transform_1(%arg0: i32, %arg1: i32) -> (i32, i32) {
    %c0_i32 = arith.constant 0 : i32
    %c0_i32_0 = arith.constant 0 : i32
    return %c0_i32, %arg1 : i32, i32
  }
  func.func @transform_2(%arg0: i32, %arg1: i32) -> (i32, i32) {
    %c0_i32 = arith.constant 0 : i32
    %c0_i32_0 = arith.constant 0 : i32
    return %c0_i32, %arg1 : i32, i32
  }
  func.func @transform_3(%arg0: i32, %arg1: i32) -> (i32, i32) {
    %c0_i32 = arith.constant 0 : i32
    %c0_i32_0 = arith.constant 0 : i32
    return %arg1, %c0_i32 : i32, i32
  }
  func.func @transform_4(%arg0: i32, %arg1: i32) -> (i32, i32) {
    %c0_i32 = arith.constant 0 : i32
    %c0_i32_0 = arith.constant 0 : i32
    %c0_i32_1 = arith.constant 0 : i32
    return %c0_i32, %c0_i32_0 : i32, i32
  }
  func.func @transform_5(%arg0: i32, %arg1: i32) -> (i32, i32) {
    %c0_i32 = arith.constant 0 : i32
    %c0_i32_0 = arith.constant 0 : i32
    return %arg0, %c0_i32 : i32, i32
  }
}

</mosaic_0001>

<bundles_post_ra>
// kernel: tpu_custom_call.1
= control target key start
LH: loop header
LB: loop body
LE: loop exit
PB: predicated region body
PF: predicated region fallthrough
CT: control target
= control target key end

     0   :  { %10 = vsyncpa [#allocation4], 0  ;;  %s585_s0 = inlined_call_operand.hbm [shape: f32[16,128], index: 0, kind: input, shape index: {}]   ;;  %s586_s1 = inlined_call_operand.hbm [shape: f32[128,128], index: 1, kind: input, shape index: {}]   ;;  %s587_s2 = inlined_call_operand.vmem [shape: f32[1,128], index: 2, kind: input, shape index: {}]   ;;  %s588_s3 = inlined_call_operand.hbm [shape: f32[128,128], index: 3, kind: input, shape index: {}]   ;;  %s589_s4 = inlined_call_operand.vmem [shape: f32[1,128], index: 4, kind: input, shape index: {}]   ;;  %s590_s5 = inlined_call_operand.hbm [shape: f32[16,128], index: 5, kind: output, shape index: {}]  }
   0x1   :  { %11 = vsyncpa [#allocation7], 0 }
   0x2   :  { %12 = vsyncpa [#allocation5], 0  ;;  %s519_s18 = smov [#allocation6]   ;;  %s520_s20 = smov [#allocation3]  }
   0x3   :  { %s30_s19 = sshll.u32 %s519_s18, 4  ;;  %s18_s21 = sshll.u32 %s520_s20, 4  ;;  %s31_s19 = int_to_ptr.vmem [resolvable:$true] %s30_s19  ;;  %s19_s21 = int_to_ptr.vmem [resolvable:$true] %s18_s21 }
   0x4   :  { %s441_s22 = scalar_lea.vmem %s31_s19, 2048  ;;  %p446_p1 = scmp.lt.s32.totalorder %s31_s19, %s31_s19 }
   0x5   :  { %p442_p0 = scmp.ne.s32.totalorder %s31_s19, %s441_s22  ;;  %p447_p2 = scmp.lt.s32.totalorder %s441_s22, %s441_s22 }
   0x7   :  { %p448_p3 = por %p447_p2, %p446_p1 }
   0x9   :  { %p449_p4 = pnand %p448_p3, %p442_p0 }
   0xb   :  { %452 = shalt.err (!%p449_p4)
}
   0xc   :  { %s521_s23 = smov 128   ;;  %s522_s24 = smov 8  }
   0xd   :  { %36 = dma.hbm_to_vmem [thread:$0]  %s586_s1, 2048, %s31_s19, [#allocation7], %s521_s23, %s521_s23, %s522_s24  }
   0xe   :  { %s461_s27 = scalar_lea.vmem %s19_s21, 256  ;;  %p466_p6 = scmp.lt.s32.totalorder %s19_s21, %s19_s21 }
   0xf   :  { %p462_p5 = scmp.ne.s32.totalorder %s19_s21, %s461_s27  ;;  %p467_p7 = scmp.lt.s32.totalorder %s461_s27, %s461_s27 }
  0x11   :  { %p468_p8 = por %p467_p7, %p466_p6 }
  0x13   :  { %p469_p9 = pnand %p468_p8, %p462_p5 }
  0x15   :  { %472 = shalt.err (!%p469_p9)
}
  0x16   :  { %24 = dma.hbm_to_vmem [thread:$0]  %s585_s0, 256, %s19_s21, [#allocation4], %s521_s23, %s521_s23, %s522_s24  }
  0x17   :  { %s523_s30 = smov [#allocation8]  }
  0x18   :  { %s44_s6 = sshll.u32 %s523_s30, 4  ;;  %s45_s6 = int_to_ptr.vmem [resolvable:$true] %s44_s6 }
  0x19   :  { %s481_s7 = scalar_lea.vmem %s45_s6, 2048  ;;  %p486_p11 = scmp.lt.s32.totalorder %s45_s6, %s45_s6 }
  0x1a   :  { %p482_p10 = scmp.ne.s32.totalorder %s45_s6, %s481_s7  ;;  %p487_p12 = scmp.lt.s32.totalorder %s481_s7, %s481_s7 }
  0x1c   :  { %p488_p13 = por %p487_p12, %p486_p11 }
  0x1e   :  { %p489_p0 = pnand %p488_p13, %p482_p10 }
  0x20   :  { %492 = shalt.err (!%p489_p0)
}
  0x21   :  { %50 = dma.hbm_to_vmem [thread:$0]  %s588_s3, 2048, %s45_s6, [#allocation7], %s521_s23, %s521_s23, %s522_s24  }
  0x22   :  { %513 = dma.done.wait [#allocation4], 256  }
  0x23   :  { %514 = vsyncadd [#allocation4], 4294967040 }
  0x24   :  { %515 = dma.done.wait [#allocation7], 4096  }
  0x25   :  { %516 = vsyncadd [#allocation7], 4294963200  ;;  %v92_v0 = vld [vmem:[#allocation6 + $0x78] sm:$0xff]  ;;  %v91_v1 = vld [vmem:[#allocation6 + $0x70] sm:$0xff]  ;;  %s524_s10 = smov [#allocation9]  }
  0x26   :  { %353 = vmatprep.subr.mxu0 %v92_v0  ;;  %v90_v2 = vld [vmem:[#allocation6 + $0x68] sm:$0xff]  ;;  %v89_v3 = vld [vmem:[#allocation6 + $0x60] sm:$0xff]  ;;  %v75_v4 = vld [vmem:[#allocation3] sm:$0xff]  ;;  %s302_s11 = sshll.u32 %s524_s10, 4  ;;  %s303_s11 = int_to_ptr.vmem [resolvable:$true] %s302_s11 }
  0x27   :  { %354 = vmatpush3.msra.mxu0 %v92_v0  ;;  %v88_v5 = vld [vmem:[#allocation6 + $0x58] sm:$0xff]  ;;  %385 = vmatprep.mubr.f32.mxu0 %v75_v4  ;;  %v87_v6 = vld [vmem:[#allocation6 + $0x50] sm:$0xff]  ;;  %v86_v7 = vld [vmem:[#allocation6 + $0x48] sm:$0xff]  ;;  %s493_s12 = scalar_lea.vmem %s303_s11, 256  ;;  %p498_p2 = scmp.lt.s32.totalorder %s303_s11, %s303_s11 }
  0x28   :  { %355 = vmatprep.subr.mxu0 %v91_v1  ;;  %v85_v8 = vld [vmem:[#allocation6 + $0x40] sm:$0xff]  ;;  %v84_v9 = vld [vmem:[#allocation6 + $0x38] sm:$0xff]  ;;  %v83_v10 = vld [vmem:[#allocation6 + $0x30] sm:$0xff]  ;;  %p494_p1 = scmp.ne.s32.totalorder %s303_s11, %s493_s12  ;;  %p499_p3 = scmp.lt.s32.totalorder %s493_s12, %s493_s12 }
  0x29   :  { %356 = vmatpush3.msra.mxu0 %v91_v1  ;;  %v82_v11 = vld [vmem:[#allocation6 + $0x28] sm:$0xff]  ;;  %v81_v12 = vld [vmem:[#allocation6 + $0x20] sm:$0xff]  ;;  %v80_v13 = vld [vmem:[#allocation6 + $0x18] sm:$0xff] }
  0x2a   :  { %357 = vmatprep.subr.mxu0 %v90_v2  ;;  %v79_v14 = vld [vmem:[#allocation6 + $0x10] sm:$0xff]  ;;  %v78_v15 = vld [vmem:[#allocation6 + $0x8] sm:$0xff]  ;;  %v77_v16 = vld [vmem:[#allocation6] sm:$0xff]  ;;  %p500_p4 = por %p499_p3, %p498_p2 }
  0x2b   :  { %358 = vmatpush3.msra.mxu0 %v90_v2  ;;  %v76_v17 = vld [vmem:[#allocation3 + $0x8] sm:$0xff]  ;;  %v209_v19 = vld [vmem:[#allocation8 + $0x70] sm:$0xff]  ;;  %v208_v20 = vld [vmem:[#allocation8 + $0x68] sm:$0xff] }
  0x2c   :  { %359 = vmatprep.subr.mxu0 %v89_v3  ;;  %v210_v18 = vld [vmem:[#allocation8 + $0x78] sm:$0xff]  ;;  %v207_v21 = vld [vmem:[#allocation8 + $0x60] sm:$0xff]  ;;  %v205_v23 = vld [vmem:[#allocation8 + $0x50] sm:$0xff]  ;;  %p501_p5 = pnand %p500_p4, %p494_p1 }
  0x2d   :  { %360 = vmatpush3.msra.mxu0 %v89_v3  ;;  %388 = vmatprep.subr.mxu1 %v210_v18  ;;  %v206_v22 = vld [vmem:[#allocation8 + $0x58] sm:$0xff]  ;;  %v204_v24 = vld [vmem:[#allocation8 + $0x48] sm:$0xff]  ;;  %v203_v25 = vld [vmem:[#allocation8 + $0x40] sm:$0xff] }
  0x2e   :  { %361 = vmatprep.subr.mxu0 %v88_v5  ;;  %389 = vmatpush3.msra.mxu1 %v210_v18  ;;  %v202_v26 = vld [vmem:[#allocation8 + $0x38] sm:$0xff]  ;;  %v201_v27 = vld [vmem:[#allocation8 + $0x30] sm:$0xff]  ;;  %v200_v28 = vld [vmem:[#allocation8 + $0x28] sm:$0xff] }
  0x2f   :  { %362 = vmatpush3.msra.mxu0 %v88_v5  ;;  %390 = vmatprep.subr.mxu1 %v209_v19  ;;  %v199_v29 = vld [vmem:[#allocation8 + $0x20] sm:$0xff]  ;;  %v198_v30 = vld [vmem:[#allocation8 + $0x18] sm:$0xff]  ;;  %v197_v31 = vld [vmem:[#allocation8 + $0x10] sm:$0xff] }
  0x30   :  { %363 = vmatprep.subr.mxu0 %v87_v6  ;;  %391 = vmatpush3.msra.mxu1 %v209_v19  ;;  %v196_v32 = vld [vmem:[#allocation8 + $0x8] sm:$0xff]  ;;  %v195_v33 = vld [vmem:[#allocation8] sm:$0xff]  ;;  %v316_v34 = vld [vmem:[%s587_s2] ss:$0 sm:$0xff] }
  0x31   :  { %364 = vmatpush3.msra.mxu0 %v87_v6  ;;  %392 = vmatprep.subr.mxu1 %v208_v20  ;;  %v315_v57 = vld [vmem:[%s589_s4] ss:$0 sm:$0xff] }
  0x32   :  { %365 = vmatprep.subr.mxu0 %v86_v7  ;;  %393 = vmatpush3.msra.mxu1 %v208_v20 }
  0x33   :  { %366 = vmatpush3.msra.mxu0 %v86_v7  ;;  %394 = vmatprep.subr.mxu1 %v207_v21 }
  0x34   :  { %367 = vmatprep.subr.mxu0 %v85_v8  ;;  %395 = vmatpush3.msra.mxu1 %v207_v21 }
  0x35   :  { %368 = vmatpush3.msra.mxu0 %v85_v8  ;;  %396 = vmatprep.subr.mxu1 %v206_v22 }
  0x36   :  { %369 = vmatprep.subr.mxu0 %v84_v9  ;;  %397 = vmatpush3.msra.mxu1 %v206_v22 }
  0x37   :  { %370 = vmatpush3.msra.mxu0 %v84_v9  ;;  %398 = vmatprep.subr.mxu1 %v205_v23 }
  0x38   :  { %371 = vmatprep.subr.mxu0 %v83_v10  ;;  %399 = vmatpush3.msra.mxu1 %v205_v23 }
  0x39   :  { %372 = vmatpush3.msra.mxu0 %v83_v10  ;;  %400 = vmatprep.subr.mxu1 %v204_v24 }
  0x3a   :  { %373 = vmatprep.subr.mxu0 %v82_v11  ;;  %401 = vmatpush3.msra.mxu1 %v204_v24 }
  0x3b   :  { %374 = vmatpush3.msra.mxu0 %v82_v11  ;;  %402 = vmatprep.subr.mxu1 %v203_v25 }
  0x3c   :  { %375 = vmatprep.subr.mxu0 %v81_v12  ;;  %403 = vmatpush3.msra.mxu1 %v203_v25 }
  0x3d   :  { %376 = vmatpush3.msra.mxu0 %v81_v12  ;;  %404 = vmatprep.subr.mxu1 %v202_v26 }
  0x3e   :  { %377 = vmatprep.subr.mxu0 %v80_v13  ;;  %405 = vmatpush3.msra.mxu1 %v202_v26 }
  0x3f   :  { %378 = vmatpush3.msra.mxu0 %v80_v13  ;;  %406 = vmatprep.subr.mxu1 %v201_v27 }
  0x40   :  { %379 = vmatprep.subr.mxu0 %v79_v14  ;;  %407 = vmatpush3.msra.mxu1 %v201_v27 }
  0x41   :  { %380 = vmatpush3.msra.mxu0 %v79_v14  ;;  %408 = vmatprep.subr.mxu1 %v200_v28 }
  0x42   :  { %381 = vmatprep.subr.mxu0 %v78_v15  ;;  %409 = vmatpush3.msra.mxu1 %v200_v28 }
  0x43   :  { %382 = vmatpush3.msra.mxu0 %v78_v15  ;;  %410 = vmatprep.subr.mxu1 %v199_v29 }
  0x44   :  { %383 = vmatprep.subr.mxu0 %v77_v16  ;;  %411 = vmatpush3.msra.mxu1 %v199_v29 }
  0x45   :  { %384 = vmatpush3.msra.mxu0 %v77_v16  ;;  %412 = vmatprep.subr.mxu1 %v198_v30 }
  0x46   :  { %386 = vmatmul.mubr.f32.vlgmr.msra.gmra.mxu0 %v76_v17  ;;  %413 = vmatpush3.msra.mxu1 %v198_v30 }
  0x47   :  { %414 = vmatprep.subr.mxu1 %v197_v31 }
  0x48   :  { %415 = vmatpush3.msra.mxu1 %v197_v31 }
  0x49   :  { %416 = vmatprep.subr.mxu1 %v196_v32 }
  0x4a   :  { %417 = vmatpush3.msra.mxu1 %v196_v32 }
  0x4b   :  { %418 = vmatprep.subr.mxu1 %v195_v33 }
  0x4c   :  { %419 = vmatpush3.msra.mxu1 %v195_v33 }
 0x106   :  { %v387_v35 = vpop.f32.mrf.mxu0 }
 0x107   :  { %v172_v36 = vadd.f32 %v387_v35, %v316_v34 }
 0x108   :  { %v166_v37 = vpop.f32.mrf.mxu0 }
 0x109   :  { %v178_v38 = vmul.f32 %v172_v36, %v172_v36  ;;  %v167_v39 = vadd.f32 %v316_v34, %v166_v37  ;;  %v176_v54 = vmul.f32 0.5, %v172_v36 }
 0x10b   :  { %v180_v40 = vmul.f32 %v178_v38, %v172_v36  ;;  %v177_v41 = vmul.f32 %v167_v39, %v167_v39  ;;  %v175_v52 = vmul.f32 0.5, %v167_v39 }
 0x10d   :  { %v182_v42 = vmul.f32 0.044715, %v180_v40  ;;  %v179_v43 = vmul.f32 %v177_v41, %v167_v39 }
 0x10f   :  { %v184_v44 = vadd.f32 %v182_v42, %v172_v36  ;;  %v181_v45 = vmul.f32 0.044715, %v179_v43 }
 0x111   :  { %v186_v46 = vmul.f32 0.7978846, %v184_v44  ;;  %v183_v47 = vadd.f32 %v181_v45, %v167_v39 }
 0x113   :  { %v185_v48 = vmul.f32 0.7978846, %v183_v47  ;;  %429 = vtanh.f32 %v186_v46 }
 0x115   :  { %431 = vtanh.f32 %v185_v48 }
 0x120   :  { %v430_v49 = vpop.eup %429 }
 0x121   :  { %v190_v51 = vadd.f32 1.0, %v430_v49 }
 0x122   :  { %v432_v50 = vpop.eup %431 }
 0x123   :  { %v189_v53 = vadd.f32 1.0, %v432_v50  ;;  %v192_v56 = vmul.f32 %v190_v51, %v176_v54 }
 0x125   :  { %v191_v55 = vmul.f32 %v189_v53, %v175_v52 }
 0x127   :  { %420 = vmatprep.mubr.f32.mxu1 %v191_v55 }
 0x128   :  { %421 = vmatmul.mubr.f32.vlgmr.msra.gmra.mxu1 %v192_v56 }
 0x1e8   :  { %v422_v58 = vpop.f32.mrf.mxu1 }
 0x1e9   :  { %v287_v59 = vadd.f32 %v422_v58, %v315_v57 }
 0x1ea   :  { %v277_v60 = vpop.f32.mrf.mxu1 }
 0x1eb   :  { %296 = vst [vmem:[#allocation9 + $0x8] sm:$0xff] %v287_v59  ;;  %v286_v61 = vadd.f32 %v315_v57, %v277_v60 }
 0x1ed   :  { %295 = vst [vmem:[#allocation9] sm:$0xff] %v286_v61 }
 0x1ee   :  { %504 = shalt.err (!%p501_p5)
}
 0x1ef   :  { %308 = dma.vmem_to_hbm [thread:$0]  %s303_s11, 256, %s590_s5, [#allocation5], %s521_s23, %s521_s23, %s522_s24  }
 0x1f0   :  { %517 = dma.done.wait [#allocation5], 256  }
 0x1f1   :  { %518 = vsyncadd [#allocation5], 4294967040 }
 0x1f2   :  { %312 = vsyncpa [#allocation4], 1 }
 0x1f3   :  { %313 = vsyncpa [#allocation7], 1 }
 0x1f4   :  { %314 = vsyncpa [#allocation5], 1 }

</bundles_post_ra>
